<compile_context>
chip_gen: v5e
topology: v5e:2x2
jax: 0.10.0
libtpu: 0.0.40
codegen_flags: <defaults>
</compile_context>

<pallas_src>
import jax
import jax.numpy as jnp
from jax.experimental import pallas as pl
from jax.experimental.pallas import tpu as pltpu


def _round_up(x, m):
    return (x + m - 1) // m * m


def make_gated_conv_kernel(TL, C_in, C_out, C_pad, K):
    pad = K // 2

    def kernel(x_ref, halo_ref, w_ref, b_ref, o_ref):
        # x_ref:    (1, TL, C_in)        bf16  current length tile
        # halo_ref: (B*nt, 2*pad, C_in)  bf16  resident halo: rows [0:pad] just before each
        #                                      tile, rows [pad:2*pad] just after (zeros at
        #                                      the sequence ends)
        # w_ref:    (K, C_in, 2*C_pad)   bf16  per-tap fused [conv | gate] weights, each
        #                                      half padded to a 128-lane boundary
        # b_ref:    (1, 2*C_pad)         f32   fused bias (same padding)
        # o_ref:    (1, TL, C_out)
        j = pl.program_id(0)                   # length-tile index
        b = pl.program_id(1)                   # batch index
        nt = pl.num_programs(0)

        x = x_ref[0]                           # (TL, C_in) bf16
        halo = halo_ref[b * nt + j]            # (2*pad, C_in) bf16

        # Center tap first (no shift), then K-1 accumulating matmuls on shifted views.
        # Output row i of tap k needs x row (i + k - pad); out-of-tile rows come from halo.
        acc = jnp.dot(x, w_ref[pad], preferred_element_type=jnp.float32)  # (TL, 2*C_pad) f32
        for k in range(K):
            d = k - pad
            if d == 0:
                continue
            if d < 0:
                # xs[i] = x[i + d]; the first -d rows come from the "before" halo rows.
                xs = jnp.concatenate([halo[pad + d:pad], x[:TL + d]], axis=0)
            else:
                # xs[i] = x[i + d]; the last d rows come from the "after" halo rows.
                xs = jnp.concatenate([x[d:], halo[pad:pad + d]], axis=0)
            acc = acc + jnp.dot(xs, w_ref[k], preferred_element_type=jnp.float32)

        acc = acc + b_ref[...]                 # single fused bias add
        conv = acc[:, :C_out]                  # lanes [0, C_out)
        gate = acc[:, C_pad:C_pad + C_out]     # starts on a 128-lane boundary (free split)
        o_ref[0] = (conv * jax.nn.sigmoid(gate)).astype(o_ref.dtype)

    return kernel


def _pick_tile(L, target=2048):
    """Largest multiple of 8 that divides L and is <= target; fall back to L."""
    best = None
    for t in range(8, min(L, target) + 1, 8):
        if L % t == 0:
            best = t
    return best if best is not None else L


def _vmem_limit_bytes():
    """Generation-aware VMEM cap: ~half of physical (32 MiB v7x, 64 MiB v5e/v6e)."""
    try:
        cap = pltpu.get_tpu_info().vmem_capacity_bytes
        return min(cap // 2, 64 * 1024 * 1024)
    except Exception:
        return 48 * 1024 * 1024   # previous known-good flat cap


def gated_conv_unit(x, w_conv, b_conv, w_gate, b_gate, kernel_size=3, tl=None,
                    out_dtype=None):
    """x: (B, L, C_in); w_*: (C_out, C_in, K) torch Conv1d layout; b_*: (C_out,).

    Returns (B, L, C_out) == GatedConvUnit.forward(x) with 'same' padding.
    Pass out_dtype=jnp.bfloat16 on v6e/v7x to cut output HBM traffic.
    """
    B, L, C_in = x.shape
    C_out, C_in_w, K = w_conv.shape
    assert C_in_w == C_in and K == kernel_size
    assert K % 2 == 1 and K >= 3, "odd kernel_size >= 3 expected"
    pad = K // 2
    out_dtype = x.dtype if out_dtype is None else out_dtype

    if tl is None:
        tl = _pick_tile(L)
    assert L % tl == 0 and tl % 8 == 0, "length must divide into 8-aligned tiles"
    assert tl > pad, "length tile must exceed the conv halo"
    nt = L // tl

    # Fused per-tap weights: w_fused[k, c_in, c_out]          = w_conv[c_out, c_in, k]
    #                        w_fused[k, c_in, C_pad + c_out]  = w_gate[c_out, c_in, k]
    # Each half is zero-padded to C_pad = round_up(C_out, 128) so the conv/gate split
    # inside the kernel lands exactly on a vreg lane boundary.
    C_pad = _round_up(C_out, 128)
    wc = jnp.transpose(w_conv, (2, 1, 0)).astype(jnp.bfloat16)     # (K, C_in, C_out)
    wg = jnp.transpose(w_gate, (2, 1, 0)).astype(jnp.bfloat16)
    w_fused = jnp.zeros((K, C_in, 2 * C_pad), jnp.bfloat16)
    w_fused = w_fused.at[:, :, :C_out].set(wc)
    w_fused = w_fused.at[:, :, C_pad:C_pad + C_out].set(wg)
    b_fused = jnp.zeros((1, 2 * C_pad), jnp.float32)
    b_fused = b_fused.at[0, :C_out].set(b_conv.astype(jnp.float32))
    b_fused = b_fused.at[0, C_pad:C_pad + C_out].set(b_gate.astype(jnp.float32))

    # bf16 operands for the MXU fast path (f32 accumulation happens in-kernel).
    xb = x.astype(jnp.bfloat16)

    # Halo rows for every (batch, tile): the pad rows just before and just after each
    # tile, zeroed at the sequence boundaries.  KiB-scale, so it is kept fully resident
    # in VMEM via a constant-index BlockSpec: zero per-step halo DMAs.
    starts = jnp.arange(nt) * tl
    idx = jnp.concatenate(
        [starts[:, None] + jnp.arange(-pad, 0)[None, :],       # rows before each tile
         starts[:, None] + tl + jnp.arange(pad)[None, :]],     # rows after each tile
        axis=1)                                                # (nt, 2*pad)
    valid = (idx >= 0) & (idx < L)
    halo = jnp.where(valid[None, :, :, None],
                     xb[:, jnp.clip(idx, 0, L - 1), :],
                     jnp.zeros((), jnp.bfloat16))              # (B, nt, 2*pad, C_in)
    halo = halo.reshape(B * nt, 2 * pad, C_in)

    kernel = make_gated_conv_kernel(tl, C_in, C_out, C_pad, K)

    out = pl.pallas_call(
        kernel,
        out_shape=jax.ShapeDtypeStruct((B, L, C_out), out_dtype),
        grid_spec=pltpu.PrefetchScalarGridSpec(
            num_scalar_prefetch=0,
            # nt leads so the bigger axis is split across v7x's two TensorCores even
            # when B == 1; both axes are independent ("parallel").
            grid=(nt, B),
            in_specs=[
                pl.BlockSpec((1, tl, C_in), lambda j, b: (b, j, 0)),
                # Constant block index => fetched once, resident for the whole grid.
                pl.BlockSpec((B * nt, 2 * pad, C_in), lambda j, b: (0, 0, 0)),
                pl.BlockSpec((K, C_in, 2 * C_pad), lambda j, b: (0, 0, 0)),
                pl.BlockSpec((1, 2 * C_pad), lambda j, b: (0, 0)),
            ],
            out_specs=pl.BlockSpec((1, tl, C_out), lambda j, b: (b, j, 0)),
        ),
        compiler_params=pltpu.CompilerParams(
            dimension_semantics=("parallel", "parallel"),
            vmem_limit_bytes=_vmem_limit_bytes(),
        ),
    )(xb, halo, w_fused, b_fused)
    return out


def gated_conv_unit_ref(x, w_conv, b_conv, w_gate, b_gate):
    """Pure-JAX reference mirroring torch semantics (NCL conv)."""
    x_ncl = jnp.transpose(x, (0, 2, 1))                          # (B, C_in, L)
    dn = jax.lax.conv_dimension_numbers(x_ncl.shape, w_conv.shape,
                                        ("NCH", "OIH", "NCH"))
    pad = w_conv.shape[-1] // 2
    conv = jax.lax.conv_general_dilated(x_ncl, w_conv, (1,), [(pad, pad)],
                                        dimension_numbers=dn)
    conv = conv + b_conv[None, :, None]
    gate = jax.lax.conv_general_dilated(x_ncl, w_gate, (1,), [(pad, pad)],
                                        dimension_numbers=dn)
    gate = gate + b_gate[None, :, None]
    out = conv * jax.nn.sigmoid(gate)
    return jnp.transpose(out, (0, 2, 1))                         # (B, L, C_out)


if __name__ == "__main__":
    B, L, C_in, C_out, K = 2, 64, 8, 16, 3

    key = jax.random.PRNGKey(0)
    kx, kwc, kbc, kwg, kbg = jax.random.split(key, 5)

    x = jax.random.normal(kx, (B, L, C_in), dtype=jnp.float32)
    # Torch Conv1d weight layout (C_out, C_in, K).
    w_conv = jax.random.normal(kwc, (C_out, C_in, K), dtype=jnp.float32) * 0.1
    b_conv = jax.random.normal(kbc, (C_out,), dtype=jnp.float32) * 0.1
    w_gate = jax.random.normal(kwg, (C_out, C_in, K), dtype=jnp.float32) * 0.1
    b_gate = jax.random.normal(kbg, (C_out,), dtype=jnp.float32) * 0.1

    # tl=16 exercises the multi-tile + halo path on this small demo shape.
    out = gated_conv_unit(x, w_conv, b_conv, w_gate, b_gate, kernel_size=K, tl=16)
    out = jax.block_until_ready(out)

    # Reference computed on the same bf16-rounded operands the kernel uses.
    xb = x.astype(jnp.bfloat16).astype(jnp.float32)
    wcb = w_conv.astype(jnp.bfloat16).astype(jnp.float32)
    wgb = w_gate.astype(jnp.bfloat16).astype(jnp.float32)
    ref = gated_conv_unit_ref(xb, wcb, b_conv, wgb, b_gate)

    assert out.shape == (B, L, C_out)
    max_err = float(jnp.max(jnp.abs(out - ref)))
    assert jnp.allclose(out, ref, atol=2e-3, rtol=2e-3), max_err

    print("KERNEL_OK")
</pallas_src>

<mosaic_0001>
module attributes {stable_mosaic.version = 11 : i64} {
  func.func @kernel(%arg0: i32, %arg1: i32, %arg2: memref<1x16x8xbf16, #tpu.memory_space<vmem>>, %arg3: memref<8x2x8xbf16, #tpu.memory_space<vmem>>, %arg4: memref<3x8x256xbf16, #tpu.memory_space<vmem>>, %arg5: memref<1x256xf32, #tpu.memory_space<vmem>>, %arg6: memref<1x16x16xf32, #tpu.memory_space<vmem>>) attributes {dimension_semantics = [#tpu.dimension_semantics<parallel>, #tpu.dimension_semantics<parallel>], iteration_bounds = array<i64: 4, 2>, scalar_prefetch = 0 : i64, scratch_operands = 0 : i64, tpu.core_type = #tpu.core_type<tc>, window_params = [{transform_indices = @transform_0, window_bounds = array<i64: 1, 16, 8>}, {pipeline_mode = #tpu.pipeline_mode<synchronous>, transform_indices = @transform_1, window_bounds = array<i64: 8, 2, 8>}, {pipeline_mode = #tpu.pipeline_mode<synchronous>, transform_indices = @transform_2, window_bounds = array<i64: 3, 8, 256>}, {pipeline_mode = #tpu.pipeline_mode<synchronous>, transform_indices = @transform_3, window_bounds = array<i64: 1, 256>}, {transform_indices = @transform_4, window_bounds = array<i64: 1, 16, 16>}]} {
    %c0 = arith.constant 0 : index
    %c0_0 = arith.constant 0 : index
    %c0_1 = arith.constant 0 : index
    %0 = vector.load %arg2[%c0, %c0_0, %c0_1] : memref<1x16x8xbf16, #tpu.memory_space<vmem>>, vector<1x16x8xbf16>
    %1 = vector.shape_cast %0 : vector<1x16x8xbf16> to vector<16x8xbf16>
    %c4_i32 = arith.constant 4 : i32
    %2 = arith.muli %arg1, %c4_i32 : i32
    %3 = arith.addi %2, %arg0 : i32
    %4 = arith.index_cast %3 : i32 to index
    %c0_2 = arith.constant 0 : index
    %c0_3 = arith.constant 0 : index
    %5 = vector.load %arg3[%4, %c0_2, %c0_3] : memref<8x2x8xbf16, #tpu.memory_space<vmem>>, vector<1x2x8xbf16>
    %6 = vector.shape_cast %5 : vector<1x2x8xbf16> to vector<2x8xbf16>
    %c1 = arith.constant 1 : index
    %c0_4 = arith.constant 0 : index
    %c0_5 = arith.constant 0 : index
    %7 = vector.load %arg4[%c1, %c0_4, %c0_5] : memref<3x8x256xbf16, #tpu.memory_space<vmem>>, vector<1x8x256xbf16>
    %8 = vector.shape_cast %7 : vector<1x8x256xbf16> to vector<8x256xbf16>
    %cst = arith.constant dense<0.000000e+00> : vector<16x256xf32>
    %9 = tpu.matmul %1, %8, %cst {dimension_numbers = #tpu.dot_dimension_numbers<[1], [0], [0], [1], [0, 0, 1, 1], [], []>} : vector<16x8xbf16>, vector<8x256xbf16>, vector<16x256xf32> -> vector<16x256xf32>
    %10 = vector.extract_strided_slice %6 {offsets = [0, 0], sizes = [1, 8], strides = [1, 1]} : vector<2x8xbf16> to vector<1x8xbf16>
    %11 = vector.extract_strided_slice %1 {offsets = [0, 0], sizes = [15, 8], strides = [1, 1]} : vector<16x8xbf16> to vector<15x8xbf16>
    %12 = tpu.concatenate %10, %11 in 0 : vector<1x8xbf16>, vector<15x8xbf16> -> vector<16x8xbf16>
    %c0_6 = arith.constant 0 : index
    %c0_7 = arith.constant 0 : index
    %c0_8 = arith.constant 0 : index
    %13 = vector.load %arg4[%c0_6, %c0_7, %c0_8] : memref<3x8x256xbf16, #tpu.memory_space<vmem>>, vector<1x8x256xbf16>
    %14 = vector.shape_cast %13 : vector<1x8x256xbf16> to vector<8x256xbf16>
    %cst_9 = arith.constant dense<0.000000e+00> : vector<16x256xf32>
    %15 = tpu.matmul %12, %14, %cst_9 {dimension_numbers = #tpu.dot_dimension_numbers<[1], [0], [0], [1], [0, 0, 1, 1], [], []>} : vector<16x8xbf16>, vector<8x256xbf16>, vector<16x256xf32> -> vector<16x256xf32>
    %16 = arith.addf %9, %15 : vector<16x256xf32>
    %17 = vector.extract_strided_slice %1 {offsets = [1, 0], sizes = [15, 8], strides = [1, 1]} : vector<16x8xbf16> to vector<15x8xbf16>
    %18 = vector.extract_strided_slice %6 {offsets = [1, 0], sizes = [1, 8], strides = [1, 1]} : vector<2x8xbf16> to vector<1x8xbf16>
    %19 = tpu.concatenate %17, %18 in 0 : vector<15x8xbf16>, vector<1x8xbf16> -> vector<16x8xbf16>
    %c2 = arith.constant 2 : index
    %c0_10 = arith.constant 0 : index
    %c0_11 = arith.constant 0 : index
    %20 = vector.load %arg4[%c2, %c0_10, %c0_11] : memref<3x8x256xbf16, #tpu.memory_space<vmem>>, vector<1x8x256xbf16>
    %21 = vector.shape_cast %20 : vector<1x8x256xbf16> to vector<8x256xbf16>
    %cst_12 = arith.constant dense<0.000000e+00> : vector<16x256xf32>
    %22 = tpu.matmul %19, %21, %cst_12 {dimension_numbers = #tpu.dot_dimension_numbers<[1], [0], [0], [1], [0, 0, 1, 1], [], []>} : vector<16x8xbf16>, vector<8x256xbf16>, vector<16x256xf32> -> vector<16x256xf32>
    %23 = arith.addf %16, %22 : vector<16x256xf32>
    %c0_13 = arith.constant 0 : index
    %c0_14 = arith.constant 0 : index
    %24 = vector.load %arg5[%c0_13, %c0_14] : memref<1x256xf32, #tpu.memory_space<vmem>>, vector<1x256xf32>
    %25 = vector.broadcast %24 : vector<1x256xf32> to vector<16x256xf32>
    %26 = arith.addf %23, %25 : vector<16x256xf32>
    %27 = vector.extract_strided_slice %26 {offsets = [0, 0], sizes = [16, 16], strides = [1, 1]} : vector<16x256xf32> to vector<16x16xf32>
    %28 = vector.extract_strided_slice %26 {offsets = [0, 128], sizes = [16, 16], strides = [1, 1]} : vector<16x256xf32> to vector<16x16xf32>
    %29 = arith.negf %28 : vector<16x16xf32>
    %30 = math.exp %29 : vector<16x16xf32>
    %cst_15 = arith.constant 1.000000e+00 : f32
    %31 = vector.broadcast %cst_15 : f32 to vector<16x16xf32>
    %32 = arith.addf %31, %30 : vector<16x16xf32>
    %33 = arith.divf %31, %32 : vector<16x16xf32>
    %34 = arith.mulf %27, %33 : vector<16x16xf32>
    %c0_16 = arith.constant 0 : index
    %c0_17 = arith.constant 0 : index
    %c0_18 = arith.constant 0 : index
    %35 = vector.load %arg6[%c0_16, %c0_17, %c0_18] : memref<1x16x16xf32, #tpu.memory_space<vmem>>, vector<1x16x16xf32>
    %36 = vector.shape_cast %35 : vector<1x16x16xf32> to vector<16x16xf32>
    %37 = vector.shape_cast %34 : vector<16x16xf32> to vector<1x16x16xf32>
    tpu.vector_store %arg6[%c0_16, %c0_17, %c0_18], %37 {strides = array<i32>} : memref<1x16x16xf32, #tpu.memory_space<vmem>>, vector<1x16x16xf32>,
    return
  }
  func.func @transform_0(%arg0: i32, %arg1: i32) -> (i32, i32, i32) {
    %c0_i32 = arith.constant 0 : i32
    %c0_i32_0 = arith.constant 0 : i32
    return %arg1, %arg0, %c0_i32 : i32, i32, i32
  }
  func.func @transform_1(%arg0: i32, %arg1: i32) -> (i32, i32, i32) {
    %c0_i32 = arith.constant 0 : i32
    %c0_i32_0 = arith.constant 0 : i32
    %c0_i32_1 = arith.constant 0 : i32
    %c0_i32_2 = arith.constant 0 : i32
    return %c0_i32, %c0_i32_0, %c0_i32_1 : i32, i32, i32
  }
  func.func @transform_2(%arg0: i32, %arg1: i32) -> (i32, i32, i32) {
    %c0_i32 = arith.constant 0 : i32
    %c0_i32_0 = arith.constant 0 : i32
    %c0_i32_1 = arith.constant 0 : i32
    %c0_i32_2 = arith.constant 0 : i32
    return %c0_i32, %c0_i32_0, %c0_i32_1 : i32, i32, i32
  }
  func.func @transform_3(%arg0: i32, %arg1: i32) -> (i32, i32) {
    %c0_i32 = arith.constant 0 : i32
    %c0_i32_0 = arith.constant 0 : i32
    %c0_i32_1 = arith.constant 0 : i32
    return %c0_i32, %c0_i32_0 : i32, i32
  }
  func.func @transform_4(%arg0: i32, %arg1: i32) -> (i32, i32, i32) {
    %c0_i32 = arith.constant 0 : i32
    %c0_i32_0 = arith.constant 0 : i32
    return %arg1, %arg0, %c0_i32 : i32, i32, i32
  }
}

</mosaic_0001>

<bundles_post_ra>
// kernel: tpu_custom_call.1
= control target key start
LH: loop header
LB: loop body
LE: loop exit
PB: predicated region body
PF: predicated region fallthrough
CT: control target
= control target key end

     0   :  { %s697_s15 = smov 0   ;;  %s699_s16 = smov 0   ;;  %s794_s0 = inlined_call_operand.vmem [shape: bf16[2,64,8], index: 0, kind: input, shape index: {}]   ;;  %s795_s1 = inlined_call_operand.vmem [shape: bf16[8,2,8], index: 1, kind: input, shape index: {}]   ;;  %s796_s2 = inlined_call_operand.vmem [shape: bf16[3,8,256], index: 2, kind: input, shape index: {}]   ;;  %s797_s3 = inlined_call_operand.vmem [shape: f32[1,256], index: 3, kind: input, shape index: {}]   ;;  %s798_s4 = inlined_call_operand.vmem [shape: f32[2,64,16], index: 4, kind: output, shape index: {}]  }
   0x1   :  { %s701_s17 = smov 0   ;;  %s703_s18 = smov 0  }
   0x2   :  { %s705_s19 = smov 0  }
   0x3 LB: > { %s23_s20 = sadd.s32 1, %s662_s17  ;;  %s26_s21 = sadd.s32 1, %s666_s18  ;;  %s670_s19 = sphi %s705_s19, %s14_s19   ;;  %s666_s18 = sphi %s703_s18, %s802_s18   ;;  %s662_s17 = sphi %s701_s17, %s801_s17   ;;  %s658_s16 = sphi %s699_s16, %s800_s16   ;;  %s654_s15 = sphi %s697_s15, %s799_s15  }
   0x4   : > { %p24_p0 = scmp.ge.s32.totalorder %s23_s20, 2  ;;  %p559_p1 = scmp.ge.s32.totalorder %s670_s19, 1 }
   0x5   : > { %p183_p2 = scmp.lt.s32.totalorder %s670_s19, 9 }
   0x6   : > { %s804_s20 = smov (%p24_p0, %s23_s20), 0  ;;  %s806_s21 = smov (!%p24_p0, %s26_s21), %s666_s18 }
   0x7   : > { %p184_p3 = pnand %p559_p1, %p183_p2  ;;  %p28_p4 = scmp.ge.s32.totalorder %s806_s21, 4 }
   0x8   : > { %s560_s24 = sshll.u32 (!%p184_p3), %s658_s16, 1  ;;  %p218_p5 = scmp.lt.s32.totalorder (!%p184_p3), %s654_s15, 1 }
   0x9   : > { %s808_s21 = smov (%p28_p4, %s806_s21), 0  ;;  %187 = sbr.rel (%p184_p3) target bundleno = 212 (0xd4), region = 36 }
   0xa   : > { %p220_p6 = scmp.lt.s32.totalorder (!%p184_p3), %s560_s24, 7  ;;  %s566_s27 = sshll.u32 (!%p184_p3), %s654_s15, 2 }
   0xb   : > { %s241_s5 = sadd.s32 (!%p184_p3), %s658_s16, %s566_s27 }
   0xc   : > { %s242_s9 = scalar_lea.vmem (!%p184_p3), %s795_s1, %s241_s5 }
   0xe   : > { %v567_v0 = vld [vmem:[%s796_s2 + $0x8] sm:$0xff]  ;;  %v263_v1 = vld [vmem:[%s796_s2] sm:$0xff]  ;;  %v576_v4 = vld [vmem:[%s796_s2 + $0x10] sm:$0xff]  ;;  %vm273_vm0 = vcmask 1043456   ;;  %s810_s15 = smov (!%p218_p5, %s654_s15), 1  ;;  %s812_s24 = smov (!%p220_p6, %s560_s24), 7 }
   0xf   : > { %v310_v2 = vunpack.c.h.b16 %v567_v0  ;;  %v266_v3 = vunpack.c.h.b16 %v263_v1  ;;  %v365_v5 = vunpack.c.h.b16 %v576_v4  ;;  %v265_v6 = vunpack.c.l.b16 %v263_v1  ;;  %s561_s30 = sshll.u32 %s810_s15, 3  ;;  %v243_v17 = vld [vmem:[%s242_s9] sm:$0x1] }
  0x10   : > { %v309_v7 = vunpack.c.l.b16 %v567_v0  ;;  %v364_v10 = vunpack.c.l.b16 %v576_v4  ;;  %s746_s6 = sadd.s32 %s561_s30, %s812_s24  ;;  %vm269_vm1 = vcmask 64512   ;;  %354 = vst [vmem:[#allocation1 + $0x7] ss:$9 sm:$0xff] %v243_v17  ;;  %vm259_vm2 = vcmask 1040384   ;;  %v769_v35 = vld [vmem:[%s797_s3] sm:$0x3] }
  0x11   : > { %v312_v8 = vpack.c.b16 %v310_v2, %v310_v2  ;;  %v268_v9 = vpack.c.b16 %v266_v3, %v266_v3  ;;  %v367_v11 = vpack.c.b16 %v365_v5, %v365_v5  ;;  %v267_v12 = vpack.c.b16 %v265_v6, %v265_v6  ;;  %s562_s10 = sshll.u32 %s746_s6, 2  ;;  %s565_s16 = sshll.u32 %s746_s6, 3 }
  0x12   : > { %v311_v13 = vpack.c.b16 %v309_v7, %v309_v7  ;;  %v366_v16 = vpack.c.b16 %v364_v10, %v364_v10  ;;  %s225_s13 = scalar_lea.vmem %s794_s0, %s562_s10  ;;  %vm260_vm3 = vsmask.f32 256  ;;  %vm357_vm5 = vcmask 1047552   ;;  %s235_s24 = scalar_lea.vmem %s798_s4, %s565_s16 }
  0x13   : > { %v319_v14 = vsel %vm273_vm0, %v312_v8, 0  ;;  %v278_v15 = vsel %vm273_vm0, %v268_v9, 0  ;;  %v375_v18 = vsel %vm273_vm0, %v367_v11, 0  ;;  %v275_v19 = vsel %vm273_vm0, %v267_v12, 0  ;;  %v583_v22 = vld [vmem:[%s225_s13] sm:$0xff]  ;;  %vm261_vm4 = vmand %vm259_vm2, %vm260_vm3 }
  0x14   : > { %342 = vmatpush.bf16.msra.mxu3 %v319_v14  ;;  %301 = vmatpush.bf16.msra.mxu1 %v278_v15  ;;  %v316_v20 = vsel %vm273_vm0, %v311_v13, 0  ;;  %v372_v21 = vsel %vm273_vm0, %v366_v16, 0  ;;  %v252_v23 = vshrl.u32 %v583_v22, 16  ;;  %v255_v24 = vshll.u32 %v583_v22, 16 }
  0x15   : > { %287 = vmatpush.bf16.msra.mxu0 %v275_v19  ;;  %328 = vmatpush.bf16.msra.mxu2 %v316_v20  ;;  %vm358_vm6 = vsmask.f32 7424  ;;  %v412_v37 = vperm.slane %v769_v35, 1  ;;  %v411_v60 = vperm.slane %v769_v35, 0  ;;  %vm459_vm12 = vcmask 130048  }
  0x16   : > { %v254_v25 = vrot.slane %v252_v23, 7  ;;  %v349_v28 = vrot.slane %v255_v24, 1  ;;  %vm359_vm7 = vmand %vm357_vm5, %vm358_vm6 }
  0x17   : > { %575 = vmatmul.msk.bf16.vlgmr.msra.gmra.mxu3 %vm269_vm1, %v583_v22  ;;  %v355_v30 = vld [vmem:[#allocation1] sm:$0xff] }
  0x18   : > { %398 = vmatpush.bf16.msrb.mxu1 %v375_v18  ;;  %574 = vmatmul.msk.bf16.vlgmr.msra.gmra.mxu2 %vm269_vm1, %v583_v22  ;;  %v257_v26 = vor.u32 %v255_v24, %v254_v25  ;;  %v350_v29 = vor.u32 %v349_v28, %v252_v23 }
  0x19   : > { %384 = vmatpush.bf16.msrb.mxu0 %v372_v21 }
  0x1a   : > { %v262_v27 = vsel %vm261_vm4, %v243_v17, %v257_v26  ;;  %v360_v31 = vsel %vm359_vm7, %v350_v29, %v355_v30 }
  0x1b   : > { %573 = vmatmul.msk.bf16.vlgmr.msra.gmra.mxu1 %vm269_vm1, %v262_v27  ;;  %572 = vmatmul.msk.bf16.vlgmr.msra.gmra.mxu0 %vm269_vm1, %v262_v27 }
  0x2b   : > { %578 = vmatmul.msk.bf16.vlgmr.msrb.gmra.mxu1 %vm269_vm1, %v360_v31  ;;  %577 = vmatmul.msk.bf16.vlgmr.msrb.gmra.mxu0 %vm269_vm1, %v360_v31 }
  0x98   : > { %v303_v32 = vpop.f32.mrf.mxu1  ;;  %v289_v40 = vpop.f32.mrf.mxu0 }
  0x9a   : > { %v344_v34 = vpop.f32.mrf.mxu3 }
  0x9b   : > { %v345_v36 = vadd.f32 %v344_v34, %v303_v32  ;;  %v330_v52 = vpop.f32.mrf.mxu2 }
  0x9c   : > { %v331_v57 = vadd.f32 %v330_v52, %v289_v40 }
  0xa0   : > { %v305_v33 = vpop.f32.mrf.mxu1  ;;  %v291_v48 = vpop.f32.mrf.mxu0 }
  0xa2   : > { %v346_v42 = vpop.f32.mrf.mxu3 }
  0xa3   : > { %v347_v44 = vadd.f32 %v346_v42, %v305_v33  ;;  %v332_v1 = vpop.f32.mrf.mxu2 }
  0xa4   : > { %v333_v5 = vadd.f32 %v332_v1, %v291_v48 }
  0xa8   : > { %v400_v38 = vpop.f32.mrf.mxu1  ;;  %v386_v55 = vpop.f32.mrf.mxu0 }
  0xa9   : > { %v406_v39 = vadd.f32 %v400_v38, %v345_v36  ;;  %v405_v62 = vadd.f32 %v386_v55, %v331_v57 }
  0xab   : > { %v416_v41 = vadd.f32 %v412_v37, %v406_v39  ;;  %v415_v6 = vadd.f32 %v411_v60, %v405_v62 }
  0xad   : > { %v579_v43 = vmul.f32 -1.442695, %v416_v41 }
  0xaf   : > { %624 = vpow2.f32 %v579_v43 }
  0xb0   : > { %v402_v45 = vpop.f32.mrf.mxu1  ;;  %v388_v10 = vpop.f32.mrf.mxu0 }
  0xb1   : > { %v408_v46 = vadd.f32 %v402_v45, %v347_v44  ;;  %v407_v14 = vadd.f32 %v388_v10, %v333_v5 }
  0xb3   : > { %v418_v47 = vadd.f32 %v412_v37, %v408_v46  ;;  %v417_v19 = vadd.f32 %v411_v60, %v407_v14 }
  0xb5   : > { %v625_v49 = vpop.eup %624  ;;  %v580_v50 = vmul.f32 -1.442695, %v418_v47 }
  0xb6   : > { %v425_v51 = vadd.f32 1.0, %v625_v49 }
  0xb7   : > { %626 = vpow2.f32 %v580_v50 }
  0xb8   : > { %628 = vrcp.f32 %v425_v51  ;;  %v438_v61 = vand.u32 2147483648, %v425_v51  ;;  %v436_v0 = vand.u32 2147483647, %v425_v51  ;;  %vm432_vm9 = vweird.f32 %v425_v51 }
  0xba   : > { %v439_v4 = vor.u32 1.1754944e-38, %v438_v61  ;;  %vm437_vm11 = vcmp.eq.f32.partialorder %v436_v0, 8.507059e+37 }
  0xbd   : > { %v627_v53 = vpop.eup %626 }
  0xbe   : > { %v629_v54 = vpop.eup %628  ;;  %v426_v56 = vadd.f32 1.0, %v627_v53 }
  0xbf   : > { %v428_v58 = vmul.f32 %v629_v54, %v425_v51  ;;  %vm433_vm8 = vweird.f32 %v629_v54 }
  0xc0   : > { %630 = vrcp.f32 %v426_v56  ;;  %vm434_vm10 = vmor %vm432_vm9, %vm433_vm8  ;;  %v453_v13 = vand.u32 2147483648, %v426_v56  ;;  %v451_v16 = vand.u32 2147483647, %v426_v56  ;;  %vm447_vm14 = vweird.f32 %v426_v56 }
  0xc1   : > { %v429_v59 = vsub.f32 1.0, %v428_v58 }
  0xc2   : > { %v454_v18 = vor.u32 1.1754944e-38, %v453_v13  ;;  %vm452_vm0 = vcmp.eq.f32.partialorder %v451_v16, 8.507059e+37 }
  0xc3   : > { %v430_v63 = vmul.f32 %v629_v54, %v429_v59 }
  0xc5   : > { %v431_v2 = vadd.f32 %v629_v54, %v430_v63 }
  0xc6   : > { %v631_v3 = vpop.eup %630 }
  0xc7   : > { %v435_v7 = vsel %vm434_vm10, %v629_v54, %v431_v2  ;;  %v443_v8 = vmul.f32 %v631_v3, %v426_v56  ;;  %vm448_vm13 = vweird.f32 %v631_v3 }
  0xc8   : > { %v440_v9 = vsel %vm437_vm11, %v439_v4, %v435_v7  ;;  %vm449_vm15 = vmor %vm447_vm14, %vm448_vm13 }
  0xc9   : > { %v457_v11 = vmul.f32 %v440_v9, %v415_v6  ;;  %v444_v12 = vsub.f32 1.0, %v443_v8 }
  0xcb   : > { %460 = vst.msk [vmem:[%s235_s24] sm:$0xff] %vm459_vm12, %v457_v11  ;;  %v445_v15 = vmul.f32 %v631_v3, %v444_v12 }
  0xcd   : > { %v446_v17 = vadd.f32 %v631_v3, %v445_v15 }
  0xcf   : > { %v450_v20 = vsel %vm449_vm15, %v631_v3, %v446_v17 }
  0xd0   : > { %v455_v21 = vsel %vm452_vm0, %v454_v18, %v450_v20 }
  0xd1   : > { %v458_v22 = vmul.f32 %v455_v21, %v417_v19 }
  0xd3   : > { %461 = vst.msk [vmem:[%s235_s24 + $0x8] sm:$0xff] %vm459_vm12, %v458_v22 }
  0xd4 PF: > { %s14_s19 = sadd.s32 1, %s670_s19   ;;  %s799_s15 = smov %s662_s17 }
  0xd5   : > { %p11_p7 = scmp.ge.s32.totalorder %s14_s19, 10   ;;  %s800_s16 = smov %s666_s18 }
  0xd6   : > { %s801_s17 = smov %s804_s20  ;;  %s802_s18 = smov %s808_s21 }
  0xd7   :  { %13 = sbr.rel (!%p11_p7) target bundleno = 3 (0x3), region = 70 }

</bundles_post_ra>
